<compile_context>
chip_gen: v7x
topology: tpu7x:2x2x1
jax: 0.10.0
libtpu: 0.0.40
codegen_flags: <defaults>
</compile_context>

<pallas_src>
import functools

import jax
import jax.numpy as jnp
from jax import lax
from jax.experimental import pallas as pl
from jax.experimental.pallas import tpu as pltpu


# ----------------------------------------------------------------------------
# Kernel 1: fused conv3x3(pad=1) + bias + ReLU + avg_pool2d + flatten,
#           BATCH_TILE images per grid step (stacked along sublanes).
# ----------------------------------------------------------------------------
def _fused_feature_kernel(x_ref, w_ref, b_ref, pr_ref, pc_ref, o_ref):
    # x_ref : (BT*(H+2), (W+2)*C)   bf16; BT padded images stacked on sublanes
    # w_ref : (3, (W+2)*C, W*Cout)  bf16 banded conv matrices, one per row tap
    # b_ref : (1, W*Cout)           f32 bias broadcast along width
    # pr_ref: (BT*Ho, BT*(H+2)-2)   bf16 block-diag row-pool (drops bleed rows)
    # pc_ref: (W*Cout, Wo*Cout)     bf16 column/channel pool
    # o_ref : (BT*Ho, Wo*Cout)      f32 pooled features for this image tile
    m = pr_ref.shape[1]                                  # BT*(H+2) - 2 rows
    acc = jnp.dot(x_ref[pl.ds(0, m), :], w_ref[0],
                  preferred_element_type=jnp.float32)
    acc = acc + jnp.dot(x_ref[pl.ds(1, m), :], w_ref[1],
                        preferred_element_type=jnp.float32)
    acc = acc + jnp.dot(x_ref[pl.ds(2, m), :], w_ref[2],
                        preferred_element_type=jnp.float32)
    y = jnp.maximum(acc + b_ref[...], 0.0).astype(jnp.bfloat16)   # (M-2, W*Cout)
    rowpool = jnp.dot(pr_ref[...], y,
                      preferred_element_type=jnp.float32).astype(jnp.bfloat16)
    o_ref[...] = jnp.dot(rowpool, pc_ref[...],
                         preferred_element_type=jnp.float32)      # (BT*Ho, Wo*Cout)


def fused_feature_extract(x2, w_band, bias_row, pool_rows, pool_cols):
    """x2: (nB, BT*(H+2), (W+2)*C) bf16; returns (nB, BT*Ho, Wo*Cout) f32."""
    nb, m, wc_in = x2.shape
    rows_out = pool_rows.shape[0]
    d_out = pool_cols.shape[1]
    return pl.pallas_call(
        _fused_feature_kernel,
        out_shape=jax.ShapeDtypeStruct((nb, rows_out, d_out), jnp.float32),
        grid_spec=pltpu.PrefetchScalarGridSpec(
            num_scalar_prefetch=0,
            grid=(nb,),
            in_specs=[
                pl.BlockSpec((None, m, wc_in), lambda i: (i, 0, 0)),
                pl.BlockSpec(w_band.shape, lambda i: (0, 0, 0)),
                pl.BlockSpec(bias_row.shape, lambda i: (0, 0)),
                pl.BlockSpec(pool_rows.shape, lambda i: (0, 0)),
                pl.BlockSpec(pool_cols.shape, lambda i: (0, 0)),
            ],
            out_specs=pl.BlockSpec((None, rows_out, d_out), lambda i: (i, 0, 0)),
        ),
        compiler_params=pltpu.CompilerParams(
            dimension_semantics=("parallel",),
            vmem_limit_bytes=32 * 1024 * 1024),
    )(x2, w_band, bias_row, pool_rows, pool_cols)


def _build_banded_conv_weights(conv_w, width):
    """conv_w (Cout, C, 3, 3) -> (3, (width+2)*C, width*Cout).

    Entry [kh, p*C + c, j*Cout + d] = conv_w[d, c, kh, kw] iff p == j + kw.
    """
    cout, c, _, _ = conv_w.shape
    eye_w = jnp.eye(width, dtype=jnp.float32)
    mats = []
    for kh in range(3):
        acc = jnp.zeros(((width + 2) * c, width * cout), jnp.float32)
        for kw in range(3):
            sel = jnp.pad(eye_w, ((kw, 2 - kw), (0, 0)))          # (width+2, width)
            w_tap = conv_w[:, :, kh, kw].T.astype(jnp.float32)    # (C, Cout)
            acc = acc + jnp.einsum("pj,cd->pcjd", sel, w_tap).reshape(
                (width + 2) * c, width * cout)
        mats.append(acc)
    return jnp.stack(mats, axis=0)


def _build_pool_matrices(height, width, cout, pool, batch_tile):
    ho, wo = height // pool, width // pool
    # Per-image row pool, padded to the image's H+2 padded rows so that the
    # "bleed" rows at image boundaries of the stacked batch are dropped.
    row_base = jnp.kron(jnp.eye(ho, dtype=jnp.float32),
                        jnp.ones((1, pool), jnp.float32)) / pool   # (Ho, H)
    row_blk = jnp.pad(row_base, ((0, 0), (0, 2)))                  # (Ho, H+2)
    pool_rows = jnp.kron(jnp.eye(batch_tile, dtype=jnp.float32), row_blk)
    pool_rows = pool_rows[:, : batch_tile * (height + 2) - 2]      # (BT*Ho, M-2)
    pool_cols = jnp.kron(
        jnp.kron(jnp.eye(wo, dtype=jnp.float32),
                 jnp.ones((pool, 1), jnp.float32)),
        jnp.eye(cout, dtype=jnp.float32)) / pool                   # (W*Cout, Wo*Cout)
    return pool_rows, pool_cols


def extract_features(x, conv_w, conv_b, *, pool=4, batch_tile=8):
    """Emulates get_features: backbone layer -> avg_pool2d -> flatten (B, D)."""
    b, c, h, w = x.shape
    cout = conv_w.shape[0]
    ho, wo = h // pool, w // pool
    bt = batch_tile
    bp = ((b + bt - 1) // bt) * bt
    xf = x.astype(jnp.float32)
    if bp != b:
        xf = jnp.pad(xf, ((0, bp - b), (0, 0), (0, 0), (0, 0)))
    xp = jnp.pad(xf, ((0, 0), (0, 0), (1, 1), (1, 1)))
    # NCHW (padded) -> (nB, BT*(H+2), (W+2)*C): width & channels fold into the
    # lane dim, BT images stack along sublanes.
    x2 = xp.transpose(0, 2, 3, 1).reshape(
        bp // bt, bt * (h + 2), (w + 2) * c).astype(jnp.bfloat16)
    w_band = _build_banded_conv_weights(conv_w, w).astype(jnp.bfloat16)
    bias_row = jnp.tile(conv_b.astype(jnp.float32), w).reshape(1, w * cout)
    pool_rows, pool_cols = _build_pool_matrices(h, w, cout, pool, bt)
    feats = fused_feature_extract(x2, w_band, bias_row,
                                  pool_rows.astype(jnp.bfloat16),
                                  pool_cols.astype(jnp.bfloat16))
    # (nB, BT*Ho, Wo*Cout) -> (B, D), dropping batch padding.
    feats = feats.reshape(bp, ho, wo * cout)[:b]
    return feats.reshape(b, ho * wo * cout)                        # (B, D)


# ----------------------------------------------------------------------------
# Kernel 2: LOF decision_function.
# ----------------------------------------------------------------------------
_INT32_MAX = 2147483647


def _lof_score_kernel(k_neighbors, lbits, xt_ref, xtr_ref, tsq_ref, kd_ref,
                      lrd_ref, o_ref):
    xt = xt_ref[...]                                   # (TB, D) test features
    # Distance matmul against the pre-transposed (D, Npad) train matrix (f32).
    xy = jnp.dot(xt, xtr_ref[...], preferred_element_type=jnp.float32)  # (TB,N)
    xsq = jnp.sum(xt * xt, axis=1, keepdims=True)      # (TB, 1)
    d2 = xsq - 2.0 * xy + tsq_ref[...]                 # (TB, N); padded cols huge
    dist = jnp.sqrt(jnp.maximum(d2, 0.0))              # >= 0

    # Pack (dist, col) into one order-preserving int32 key: non-negative f32
    # bit patterns order like the floats; the low `lbits` mantissa bits are
    # replaced by the column index, so one min gives the nearest neighbour
    # with first-index tie-break and uniquely identifies it.
    col = lax.broadcasted_iota(jnp.int32, dist.shape, 1)
    low_mask = (1 << lbits) - 1
    key = jnp.bitwise_or(
        jnp.bitwise_and(pltpu.bitcast(dist, jnp.int32), jnp.int32(~low_mask)),
        col)

    reach = jnp.maximum(kd_ref[...], dist)             # (TB, N), hoisted

    # Exact-k selection: one packed-key min per iteration; reductions over
    # reach / lrd are hoisted out of the loop via the accumulated mask.
    selected = jnp.zeros(dist.shape, dtype=jnp.bool_)
    removed = jnp.int32(_INT32_MAX)
    for _ in range(k_neighbors):
        cur = jnp.min(key, axis=1, keepdims=True)
        sel = key == cur                               # exactly one True per row
        selected = jnp.logical_or(selected, sel)
        key = jnp.where(sel, removed, key)

    reach_sum = jnp.sum(jnp.where(selected, reach, 0.0), axis=1, keepdims=True)
    lrd_sum = jnp.sum(jnp.where(selected, lrd_ref[...], 0.0),
                      axis=1, keepdims=True)

    inv_k = jnp.float32(1.0 / k_neighbors)
    mean_reach = reach_sum * inv_k
    mean_lrd_nb = lrd_sum * inv_k
    # lrd_test = 1 / (mean_reach + 1e-10);  LOF score = mean_lrd_nb / lrd_test
    o_ref[...] = mean_lrd_nb * (mean_reach + 1e-10)


def lof_decision_function(x_test, fit_state, *, k_neighbors):
    train_t = fit_state["train_t"]                     # (D, Npad)
    train_sq = fit_state["train_sq"]                   # (1, Npad)
    kdist = fit_state["kdist"]                         # (1, Npad)
    lrd = fit_state["lrd"]                             # (1, Npad)
    n_real = int(fit_state["n_real"])
    assert k_neighbors < n_real, "k_neighbors must be < number of train points"
    b, d = x_test.shape
    n = train_t.shape[1]
    lbits = max(1, (n - 1).bit_length())               # bits to hold a column id
    tb = max(8, min(128, ((b + 7) // 8) * 8))          # fill sublanes / MXU rows
    bp = ((b + tb - 1) // tb) * tb
    xt = x_test.astype(jnp.float32)
    if bp != b:
        xt = jnp.pad(xt, ((0, bp - b), (0, 0)))
    out = pl.pallas_call(
        functools.partial(_lof_score_kernel, k_neighbors, lbits),
        out_shape=jax.ShapeDtypeStruct((bp, 1), jnp.float32),
        grid_spec=pltpu.PrefetchScalarGridSpec(
            num_scalar_prefetch=0,
            grid=(bp // tb,),
            in_specs=[
                pl.BlockSpec((tb, d), lambda i: (i, 0)),
                pl.BlockSpec((d, n), lambda i: (0, 0)),
                pl.BlockSpec((1, n), lambda i: (0, 0)),
                pl.BlockSpec((1, n), lambda i: (0, 0)),
                pl.BlockSpec((1, n), lambda i: (0, 0)),
            ],
            out_specs=pl.BlockSpec((tb, 1), lambda i: (i, 0)),
        ),
        compiler_params=pltpu.CompilerParams(
            dimension_semantics=("parallel",),
            vmem_limit_bytes=32 * 1024 * 1024),
    )(xt, train_t, train_sq, kdist, lrd)
    return out[:b, 0]


# ----------------------------------------------------------------------------
# Training-time fit (plain JAX, not part of forward).
# ----------------------------------------------------------------------------
def lof_fit(train_feats, k, *, lane_multiple=128):
    """k-distance and lrd of the train set + lane-padded decision constants."""
    tf = train_feats.astype(jnp.float32)
    n = tf.shape[0]
    assert k < n
    sq = jnp.sum(tf * tf, axis=1)
    d2 = sq[:, None] - 2.0 * (tf @ tf.T) + sq[None, :]
    dm = jnp.sqrt(jnp.maximum(d2, 0.0))
    order = jnp.argsort(dm, axis=1)
    d_sorted = jnp.take_along_axis(dm, order, axis=1)
    kdist = d_sorted[:, k]                              # k-th NN excluding self
    nb_idx = order[:, 1:k + 1]
    nb_d = d_sorted[:, 1:k + 1]
    reach = jnp.maximum(kdist[nb_idx], nb_d)
    lrd = 1.0 / (reach.mean(axis=1) + 1e-10)
    # Pad the train axis to a multiple of 128 lanes: zero feature columns, a
    # huge ||x||^2 sentinel (so padded distances are never selected), zero
    # kdist/lrd (never read because never selected).
    n_pad = ((n + lane_multiple - 1) // lane_multiple) * lane_multiple
    pad = n_pad - n
    return {
        "train_t": jnp.pad(tf.T, ((0, 0), (0, pad))),              # (D, Npad)
        "train_sq": jnp.pad(sq.reshape(1, n), ((0, 0), (0, pad)),
                            constant_values=1e30),                 # (1, Npad)
        "kdist": jnp.pad(kdist.reshape(1, n).astype(jnp.float32),
                         ((0, 0), (0, pad))),
        "lrd": jnp.pad(lrd.reshape(1, n).astype(jnp.float32),
                       ((0, 0), (0, pad))),
        "n_real": n,
    }


def lof_model_forward(batch, conv_w, conv_b, fit_state, *,
                      pooling_kernel_size=4, k_neighbors=20):
    """LofModel.forward: feature extraction + LOF decision_function scores."""
    feats = extract_features(batch, conv_w, conv_b, pool=pooling_kernel_size)
    return lof_decision_function(feats, fit_state, k_neighbors=k_neighbors)


# ----------------------------------------------------------------------------
# Pure-JAX references for correctness cross-checks.
# ----------------------------------------------------------------------------
def _reference_features(x, conv_w, conv_b, pool):
    y = lax.conv_general_dilated(
        x.astype(jnp.float32), conv_w.astype(jnp.float32),
        window_strides=(1, 1), padding="SAME",
        dimension_numbers=("NCHW", "OIHW", "NCHW"))
    y = jnp.maximum(y + conv_b.astype(jnp.float32)[None, :, None, None], 0.0)
    b, c, h, w = y.shape
    ho, wo = h // pool, w // pool
    y = y.reshape(b, c, ho, pool, wo, pool).mean(axis=(3, 5))
    return y.reshape(b, -1)


def _lof_scores_ref(ft_te, ft_tr, k):
    """Plain-JAX LOF decision_function on given feature matrices."""
    ft_te = ft_te.astype(jnp.float32)
    ft_tr = ft_tr.astype(jnp.float32)
    sq_tr = jnp.sum(ft_tr * ft_tr, axis=1)
    d = jnp.sqrt(jnp.maximum(
        sq_tr[:, None] - 2.0 * ft_tr @ ft_tr.T + sq_tr[None, :], 0.0))
    order = jnp.argsort(d, axis=1)
    d_sorted = jnp.take_along_axis(d, order, axis=1)
    kdist = d_sorted[:, k]
    reach = jnp.maximum(kdist[order[:, 1:k + 1]], d_sorted[:, 1:k + 1])
    lrd = 1.0 / (reach.mean(axis=1) + 1e-10)

    sq_te = jnp.sum(ft_te * ft_te, axis=1)
    dt = jnp.sqrt(jnp.maximum(
        sq_te[:, None] - 2.0 * ft_te @ ft_tr.T + sq_tr[None, :], 0.0))
    idx = jnp.argsort(dt, axis=1)[:, :k]
    nb_dt = jnp.take_along_axis(dt, idx, axis=1)
    reach_t = jnp.maximum(kdist[idx], nb_dt)
    lrd_t = 1.0 / (reach_t.mean(axis=1) + 1e-10)
    return lrd[idx].mean(axis=1) / lrd_t


# ----------------------------------------------------------------------------
if __name__ == "__main__":
    key = jax.random.PRNGKey(0)
    k1, k2, k3, k4 = jax.random.split(key, 4)

    B, C, H, W = 2, 4, 16, 16           # test images (NCHW)
    N_TRAIN = 64                        # fitted training images
    C_OUT = 8
    POOL = 4
    K_NEIGHBORS = 20                    # PyOD LOF default n_neighbors

    x_test = jax.random.normal(k1, (B, C, H, W), dtype=jnp.float32)
    x_train = jax.random.normal(k2, (N_TRAIN, C, H, W), dtype=jnp.float32)
    conv_w = 0.1 * jax.random.normal(k3, (C_OUT, C, 3, 3), dtype=jnp.float32)
    conv_b = 0.1 * jax.random.normal(k4, (C_OUT,), dtype=jnp.float32)

    # "fit" phase (not part of forward): extract train features with the same
    # Pallas pipeline, then compute LOF training statistics in plain JAX.
    train_feats = extract_features(x_train, conv_w, conv_b, pool=POOL)
    fit_state = lof_fit(train_feats, K_NEIGHBORS)

    scores = lof_model_forward(x_test, conv_w, conv_b, fit_state,
                               pooling_kernel_size=POOL,
                               k_neighbors=K_NEIGHBORS)
    scores = jax.block_until_ready(scores)
    assert scores.shape == (B,)
    assert bool(jnp.all(jnp.isfinite(scores)))

    # Check 1: LOF kernel math vs plain-JAX LOF on the SAME Pallas features
    # (isolates the decision kernel; both sides f32).
    test_feats = extract_features(x_test, conv_w, conv_b, pool=POOL)
    ref_same_feats = _lof_scores_ref(test_feats, train_feats, K_NEIGHBORS)
    assert bool(jnp.allclose(scores, ref_same_feats, rtol=5e-3, atol=5e-3))

    # Check 2: end-to-end vs all-f32 reference (feature matmuls run in bf16 on
    # the MXU with f32 accumulation, hence the looser tolerance).
    ref_full = _lof_scores_ref(
        _reference_features(x_test, conv_w, conv_b, POOL),
        _reference_features(x_train, conv_w, conv_b, POOL),
        K_NEIGHBORS)
    assert bool(jnp.allclose(scores, ref_full, rtol=5e-2, atol=5e-2))

    print("KERNEL_OK")
</pallas_src>

<mosaic_0001>
module attributes {stable_mosaic.version = 11 : i64} {
  func.func @_fused_feature_kernel(%arg0: i32, %arg1: memref<1x144x72xbf16, #tpu.memory_space<vmem>>, %arg2: memref<3x72x128xbf16, #tpu.memory_space<vmem>>, %arg3: memref<1x128xf32, #tpu.memory_space<vmem>>, %arg4: memref<32x142xbf16, #tpu.memory_space<vmem>>, %arg5: memref<128x32xbf16, #tpu.memory_space<vmem>>, %arg6: memref<1x32x32xf32, #tpu.memory_space<vmem>>) attributes {dimension_semantics = [#tpu.dimension_semantics<parallel>], iteration_bounds = array<i64: 8>, scalar_prefetch = 0 : i64, scratch_operands = 0 : i64, tpu.core_type = #tpu.core_type<tc>, window_params = [{transform_indices = @transform_0, window_bounds = array<i64: 1, 144, 72>}, {pipeline_mode = #tpu.pipeline_mode<synchronous>, transform_indices = @transform_1, window_bounds = array<i64: 3, 72, 128>}, {pipeline_mode = #tpu.pipeline_mode<synchronous>, transform_indices = @transform_2, window_bounds = array<i64: 1, 128>}, {pipeline_mode = #tpu.pipeline_mode<synchronous>, transform_indices = @transform_3, window_bounds = array<i64: 32, 142>}, {pipeline_mode = #tpu.pipeline_mode<synchronous>, transform_indices = @transform_4, window_bounds = array<i64: 128, 32>}, {transform_indices = @transform_5, window_bounds = array<i64: 1, 32, 32>}]} {
    %c0 = arith.constant 0 : index
    %c0_0 = arith.constant 0 : index
    %c0_1 = arith.constant 0 : index
    %0 = vector.load %arg1[%c0, %c0_0, %c0_1] : memref<1x144x72xbf16, #tpu.memory_space<vmem>>, vector<1x142x72xbf16>
    %1 = vector.shape_cast %0 : vector<1x142x72xbf16> to vector<142x72xbf16>
    %c0_2 = arith.constant 0 : index
    %c0_3 = arith.constant 0 : index
    %c0_4 = arith.constant 0 : index
    %2 = vector.load %arg2[%c0_2, %c0_3, %c0_4] : memref<3x72x128xbf16, #tpu.memory_space<vmem>>, vector<1x72x128xbf16>
    %3 = vector.shape_cast %2 : vector<1x72x128xbf16> to vector<72x128xbf16>
    %cst = arith.constant dense<0.000000e+00> : vector<142x128xf32>
    %4 = tpu.matmul %1, %3, %cst {dimension_numbers = #tpu.dot_dimension_numbers<[1], [0], [0], [1], [0, 0, 1, 1], [], []>} : vector<142x72xbf16>, vector<72x128xbf16>, vector<142x128xf32> -> vector<142x128xf32>
    %c0_5 = arith.constant 0 : index
    %c1 = arith.constant 1 : index
    %c0_6 = arith.constant 0 : index
    %5 = vector.load %arg1[%c0_5, %c1, %c0_6] : memref<1x144x72xbf16, #tpu.memory_space<vmem>>, vector<1x142x72xbf16>
    %6 = vector.shape_cast %5 : vector<1x142x72xbf16> to vector<142x72xbf16>
    %c1_7 = arith.constant 1 : index
    %c0_8 = arith.constant 0 : index
    %c0_9 = arith.constant 0 : index
    %7 = vector.load %arg2[%c1_7, %c0_8, %c0_9] : memref<3x72x128xbf16, #tpu.memory_space<vmem>>, vector<1x72x128xbf16>
    %8 = vector.shape_cast %7 : vector<1x72x128xbf16> to vector<72x128xbf16>
    %cst_10 = arith.constant dense<0.000000e+00> : vector<142x128xf32>
    %9 = tpu.matmul %6, %8, %cst_10 {dimension_numbers = #tpu.dot_dimension_numbers<[1], [0], [0], [1], [0, 0, 1, 1], [], []>} : vector<142x72xbf16>, vector<72x128xbf16>, vector<142x128xf32> -> vector<142x128xf32>
    %10 = arith.addf %4, %9 : vector<142x128xf32>
    %c0_11 = arith.constant 0 : index
    %c2 = arith.constant 2 : index
    %c0_12 = arith.constant 0 : index
    %11 = vector.load %arg1[%c0_11, %c2, %c0_12] : memref<1x144x72xbf16, #tpu.memory_space<vmem>>, vector<1x142x72xbf16>
    %12 = vector.shape_cast %11 : vector<1x142x72xbf16> to vector<142x72xbf16>
    %c2_13 = arith.constant 2 : index
    %c0_14 = arith.constant 0 : index
    %c0_15 = arith.constant 0 : index
    %13 = vector.load %arg2[%c2_13, %c0_14, %c0_15] : memref<3x72x128xbf16, #tpu.memory_space<vmem>>, vector<1x72x128xbf16>
    %14 = vector.shape_cast %13 : vector<1x72x128xbf16> to vector<72x128xbf16>
    %cst_16 = arith.constant dense<0.000000e+00> : vector<142x128xf32>
    %15 = tpu.matmul %12, %14, %cst_16 {dimension_numbers = #tpu.dot_dimension_numbers<[1], [0], [0], [1], [0, 0, 1, 1], [], []>} : vector<142x72xbf16>, vector<72x128xbf16>, vector<142x128xf32> -> vector<142x128xf32>
    %16 = arith.addf %10, %15 : vector<142x128xf32>
    %c0_17 = arith.constant 0 : index
    %c0_18 = arith.constant 0 : index
    %17 = vector.load %arg3[%c0_17, %c0_18] : memref<1x128xf32, #tpu.memory_space<vmem>>, vector<1x128xf32>
    %18 = vector.broadcast %17 : vector<1x128xf32> to vector<142x128xf32>
    %19 = arith.addf %16, %18 : vector<142x128xf32>
    %cst_19 = arith.constant 0.000000e+00 : f32
    %20 = vector.broadcast %cst_19 : f32 to vector<142x128xf32>
    %21 = arith.maximumf %19, %20 : vector<142x128xf32>
    %22 = arith.truncf %21 : vector<142x128xf32> to vector<142x128xbf16>
    %c0_20 = arith.constant 0 : index
    %c0_21 = arith.constant 0 : index
    %23 = vector.load %arg4[%c0_20, %c0_21] : memref<32x142xbf16, #tpu.memory_space<vmem>>, vector<32x142xbf16>
    %cst_22 = arith.constant dense<0.000000e+00> : vector<32x128xf32>
    %24 = tpu.matmul %23, %22, %cst_22 {dimension_numbers = #tpu.dot_dimension_numbers<[1], [0], [0], [1], [0, 0, 1, 1], [], []>} : vector<32x142xbf16>, vector<142x128xbf16>, vector<32x128xf32> -> vector<32x128xf32>
    %25 = arith.truncf %24 : vector<32x128xf32> to vector<32x128xbf16>
    %c0_23 = arith.constant 0 : index
    %c0_24 = arith.constant 0 : index
    %26 = vector.load %arg5[%c0_23, %c0_24] : memref<128x32xbf16, #tpu.memory_space<vmem>>, vector<128x32xbf16>
    %cst_25 = arith.constant dense<0.000000e+00> : vector<32x32xf32>
    %27 = tpu.matmul %25, %26, %cst_25 {dimension_numbers = #tpu.dot_dimension_numbers<[1], [0], [0], [1], [0, 0, 1, 1], [], []>} : vector<32x128xbf16>, vector<128x32xbf16>, vector<32x32xf32> -> vector<32x32xf32>
    %c0_26 = arith.constant 0 : index
    %c0_27 = arith.constant 0 : index
    %c0_28 = arith.constant 0 : index
    %28 = vector.load %arg6[%c0_26, %c0_27, %c0_28] : memref<1x32x32xf32, #tpu.memory_space<vmem>>, vector<1x32x32xf32>
    %29 = vector.shape_cast %28 : vector<1x32x32xf32> to vector<32x32xf32>
    %30 = vector.shape_cast %27 : vector<32x32xf32> to vector<1x32x32xf32>
    tpu.vector_store %arg6[%c0_26, %c0_27, %c0_28], %30 {strides = array<i32>} : memref<1x32x32xf32, #tpu.memory_space<vmem>>, vector<1x32x32xf32>,
    return
  }
  func.func @transform_0(%arg0: i32) -> (i32, i32, i32) {
    %c0_i32 = arith.constant 0 : i32
    %c0_i32_0 = arith.constant 0 : i32
    %c0_i32_1 = arith.constant 0 : i32
    return %arg0, %c0_i32, %c0_i32_0 : i32, i32, i32
  }
  func.func @transform_1(%arg0: i32) -> (i32, i32, i32) {
    %c0_i32 = arith.constant 0 : i32
    %c0_i32_0 = arith.constant 0 : i32
    %c0_i32_1 = arith.constant 0 : i32
    %c0_i32_2 = arith.constant 0 : i32
    return %c0_i32, %c0_i32_0, %c0_i32_1 : i32, i32, i32
  }
  func.func @transform_2(%arg0: i32) -> (i32, i32) {
    %c0_i32 = arith.constant 0 : i32
    %c0_i32_0 = arith.constant 0 : i32
    %c0_i32_1 = arith.constant 0 : i32
    return %c0_i32, %c0_i32_0 : i32, i32
  }
  func.func @transform_3(%arg0: i32) -> (i32, i32) {
    %c0_i32 = arith.constant 0 : i32
    %c0_i32_0 = arith.constant 0 : i32
    %c0_i32_1 = arith.constant 0 : i32
    return %c0_i32, %c0_i32_0 : i32, i32
  }
  func.func @transform_4(%arg0: i32) -> (i32, i32) {
    %c0_i32 = arith.constant 0 : i32
    %c0_i32_0 = arith.constant 0 : i32
    %c0_i32_1 = arith.constant 0 : i32
    return %c0_i32, %c0_i32_0 : i32, i32
  }
  func.func @transform_5(%arg0: i32) -> (i32, i32, i32) {
    %c0_i32 = arith.constant 0 : i32
    %c0_i32_0 = arith.constant 0 : i32
    %c0_i32_1 = arith.constant 0 : i32
    return %arg0, %c0_i32, %c0_i32_0 : i32, i32, i32
  }
}

</mosaic_0001>

<bundles_post_ra>
// kernel: tpu_custom_call.1
= control target key start
LH: loop header
LB: loop body
LE: loop exit
PB: predicated region body
PF: predicated region fallthrough
CT: control target
= control target key end

     0   :  { %10 = vsyncpa [#allocation3], 0  ;;  %s2400_s0 = inlined_call_operand.hbm [shape: bf16[8,144,72], index: 0, kind: input, shape index: {}]   ;;  %s2401_s1 = inlined_call_operand.hbm [shape: bf16[3,72,128], index: 1, kind: input, shape index: {}]   ;;  %s2402_s2 = inlined_call_operand.vmem [shape: f32[1,128], index: 2, kind: input, shape index: {}]   ;;  %s2403_s3 = inlined_call_operand.vmem [shape: bf16[32,142], index: 3, kind: input, shape index: {}]   ;;  %s2404_s4 = inlined_call_operand.vmem [shape: bf16[128,32], index: 4, kind: input, shape index: {}]   ;;  %s2405_s5 = inlined_call_operand.hbm [shape: f32[8,32,32], index: 5, kind: output, shape index: {}]  }
   0x1   :  { %12 = vsyncpa [#allocation3 + $0x1], 0 }
   0x2   :  { %13 = vsyncpa [#allocation6], 0 }
   0x3   :  { %14 = vsyncpa [#allocation4], 0 }
   0x4   :  { %16 = vsyncpa [#allocation4 + $0x1], 0  ;;  %s1867_s18 = smov 0   ;;  %s1869_s19 = smov 0  }
   0x5   :  { %s1871_s20 = smov 0   ;;  %s1873_s21 = smov 0  }
   0x6 LB: > { %s1888_s22 = sadd.s32 4294967295, %s1825_s21   ;;  %s1298_s23 = sadd.s32 4294967294, %s1825_s21   ;;  %s1825_s21 = sphi %s1873_s21, %s2426_s21   ;;  %s1821_s20 = sphi %s1871_s20, %s2425_s20   ;;  %s1817_s19 = sphi %s1869_s19, %s2424_s19   ;;  %s1813_s18 = sphi %s1867_s18, %s2423_s18  }
   0x7   : > { %p42_p0 = scmp.ne.s32.totalorder %s1817_s19, %s1813_s18  ;;  %p2406_p1 = scmp.eq.s32.totalorder %s1888_s22, 0 }
   0x8   : > { %p156_p3 = scmp.eq.s32.totalorder %s1298_s23, 7  ;;  %p1299_p5 = scmp.ge.s32.totalorder %s1825_s21, 1 }
   0x9   : > { %p1897_p4 = por %p2406_p1, %p42_p0  ;;  %p163_p7 = scmp.lt.s32.totalorder %s1825_s21, 9 }
   0xa   : > { %p1902_p6 = por %p156_p3, %p42_p0  ;;  %s1827_s27 = smov [#allocation5]  }
   0xb   : > { %s2410_s24 = scalar_select %p1897_p4, 1, 0 }
   0xc   : > { %s2411_s25 = scalar_select %p1902_p6, 1, 0 }
   0xd   : > { %p1907_p8 = pnand %p1299_p5, %p163_p7  ;;  %s175_s28 = sshll.u32 %s1827_s27, 4  ;;  %s176_s28 = int_to_ptr.vmem [resolvable:$true] %s175_s28 }
   0xe   : > { %s1920_s30 = sadd.s32 1, %s1825_s21   ;;  %s29_s6 = sadd.s32 1, %s1821_s20 }
   0xf   : > { %s2412_s26 = scalar_select %p1907_p8, 1, 0 }
  0x10   : > { %p1601_p9 = pneg %p1907_p8  ;;  %s26_s7 = ssub.s32 %s1825_s21, %s1920_s30 }
  0x11   : > { %s1697_s10 = scalar_lea.hbm %s2401_s1, 1728 }
  0x12   : > { %p1915_p10 = pnand %p1601_p9, %p2406_p1  ;;  %p1698_p11 = scmp.ne.s32.totalorder %s2401_s1, %s1697_s10 }
  0x13   : > { %p1704_p3 = scmp.lt.u32.totalorder %s1697_s10, %s2401_s1 }
  0x14   : > { %p1699_p12 = pneg %p1915_p10 }
  0x16   : > { %p1700_p13 = pnand %p1699_p12, %p1698_p11 }
  0x18   : > { %p1701_p0 = pneg %p1700_p13 }
  0x1a   : > { %p1706_p5 = pnand %p1704_p3, %p1701_p0 }
  0x1c   : > { %1709 = shalt.err (!%p1706_p5)
}
  0x1d   : > { %s1710_s15 = scalar_lea.vmem %s176_s28, 1728  ;;  %p1718_p2 = scmp.lt.s32.totalorder %s176_s28, %s176_s28 }
  0x1e   : > { %p1711_p7 = scmp.ne.s32.totalorder %s176_s28, %s1710_s15  ;;  %p1719_p6 = scmp.lt.s32.totalorder %s1710_s15, %s1710_s15 }
  0x20   : > { %p1713_p9 = pnand %p1711_p7, %p1699_p12  ;;  %p1720_p4 = por %p1719_p6, %p1718_p2 }
  0x22   : > { %p1714_p1 = pneg %p1713_p9 }
  0x24   : > { %p1721_p8 = pnand %p1720_p4, %p1714_p1 }
  0x26   : > { %1724 = shalt.err (!%p1721_p8)
}
  0x27   : > { %s2409_s16 = smov 64   ;;  %s1829_s17 = smov 4  }
  0x28   : > { %1604 = dma.hbm_to_vmem [thread:$0]  (!%p1915_p10), %s2401_s1, 1728, %s176_s28, [#allocation6], %s2409_s16, %s2409_s16, %s1829_s17  }
  0x29   : > { %p27_p1 = scmp.eq.s32.totalorder %s26_s7, 0  ;;  %p36_p2 = scmp.ne.s32.totalorder %s1821_s20, %s1817_s19 }
  0x2a   : > { %p37_p4 = scmp.eq.s32.totalorder %s1825_s21, 0  ;;  %p1614_p6 = scmp.lt.s32.totalorder %s1825_s21, 8 }
  0x2b   : > { %s1949_s8 = scalar_select %p27_p1, %s1821_s20, %s29_s6  }
  0x2c   : > { %p38_p8 = por %p37_p4, %p36_p2  ;;  %p2414_p11 = scmp.eq.s32.totalorder %s1888_s22, 7 }
  0x2d   : > { %s198_s29 = sand.u32 1, %s1821_s20   ;;  %s1591_s10 = smul.u32 1152, %s1825_s21 }
  0x2e   : > { %p1953_p12 = por %p2414_p11, %p36_p2  ;;  %s1590_s11 = smul.u32 72, %s198_s29 }
  0x2f   : > { %p1959_p13 = pnand %p1614_p6, %p38_p8  ;;  %s1966_s6 = scalar_lea.hbm %s2400_s0, %s1591_s10 }
  0x30   : > { %s202_s13 = scalar_lea.vmem [#allocation2], %s1590_s11  ;;  %s1970_s15 = scalar_lea.sflag [#allocation3], %s198_s29 }
  0x31   : > { %s209_s14 = sshll.u32 %s202_s13, 4  ;;  %s1725_s23 = scalar_lea.hbm %s1966_s6, 1152  ;;  %s1968_s14 = int_to_ptr.vmem [resolvable:$true] %s209_s14 }
  0x32   : > { %p1726_p10 = scmp.ne.s32.totalorder %s1966_s6, %s1725_s23  ;;  %p1727_p0 = pneg %p1959_p13 }
  0x33   : > { %s1730_s28 = scalar_lea.hbm %s2400_s0, 9216  ;;  %p1731_p7 = scmp.lt.u32.totalorder %s1966_s6, %s2400_s0 }
  0x34   : > { %p1728_p3 = pnand %p1727_p0, %p1726_p10  ;;  %p1732_p9 = scmp.lt.u32.totalorder %s1730_s28, %s1725_s23 }
  0x35   : > { %p1734_p2 = scmp.lt.u32.totalorder %s1725_s23, %s1966_s6 }
  0x36   : > { %p1729_p5 = pneg %p1728_p3  ;;  %p1733_p1 = por %p1732_p9, %p1731_p7 }
  0x38   : > { %p1735_p4 = por %p1734_p2, %p1733_p1 }
  0x3a   : > { %p1736_p6 = pnand %p1735_p4, %p1729_p5 }
  0x3c   : > { %1739 = shalt.err (!%p1736_p6)
}
  0x3d   : > { %s1740_s29 = scalar_lea.vmem %s1968_s14, 1152  ;;  %s1830_s11 = smov [#allocation2]  }
  0x3e   : > { %p1741_p8 = scmp.ne.s32.totalorder %s1968_s14, %s1740_s29  ;;  %s1745_s13 = sshll.u32 %s1830_s11, 4  ;;  %s1746_s13 = int_to_ptr.vmem [resolvable:$false] %s1745_s13 }
  0x3f   : > { %s1747_s16 = scalar_lea.vmem %s1746_s13, 2304  ;;  %p1748_p3 = scmp.lt.s32.totalorder %s1968_s14, %s1746_s13 }
  0x40   : > { %p1743_p11 = pnand %p1741_p8, %p1727_p0  ;;  %p1749_p7 = scmp.lt.s32.totalorder %s1747_s16, %s1740_s29 }
  0x42   : > { %p1744_p10 = pneg %p1743_p11  ;;  %p1750_p9 = por %p1749_p7, %p1748_p3 }
  0x44   : > { %p1751_p1 = pnand %p1750_p9, %p1744_p10 }
  0x46   : > { %1754 = shalt.err (!%p1751_p1)
}
  0x47   : > { %s2417_s23 = smov 64   ;;  %p2418_p0 = scmp.ne.s32.totalorder %s2412_s26, 0 }
  0x48   : > { %1608 = dma.hbm_to_vmem [thread:$0]  (!%p1959_p13), %s1966_s6, 1152, %s1968_s14, %s1970_s15, %s2417_s23, %s2417_s23, %s1829_s17  }
  0x49   : > { %221 = sbr.rel (%p2418_p0) target bundleno = 922 (0x39a), region = 40  ;;  %s2004_s27 = sand.u32 (!%p2418_p0), 1, %s1817_s19  }
  0x4a   : > { %s1592_s10 = smul.u32 (!%p2418_p0), 72, %s2004_s27  ;;  %s224_s28 = scalar_lea.sflag (!%p2418_p0), [#allocation3], %s2004_s27 }
  0x4b   : > { %p2419_p5 = scmp.ne.s32.totalorder (!%p2418_p0), %s2410_s24, 0 }
  0x4c   : > { %s2008_s7 = scalar_lea.vmem (!%p2418_p0), [#allocation2], %s1592_s10 }
  0x50   : > { %1800 = dma.done.wait (%p2419_p5), %s224_s28, 1152  }
  0x51   : > { %1802 = vsyncadd (%p2419_p5), %s224_s28, 4294966144  ;;  %p2420_p13 = scmp.eq.s32.totalorder %s1888_s22, 0 }
  0x53   : > { %1804 = dma.done.wait (%p2420_p13), [#allocation6], 1728   ;;  %p2421_p2 = pmov %p2420_p13 }
  0x54   : > { %v1831_v0 = vmov 0.0   ;;  %vm1832_vm0 = vmmov 0   ;;  %v1657_v1 = vld [vmem:[#allocation5 + $0x24] sm:$0xff]   ;;  %v1659_v3 = vld [vmem:[#allocation5 + $0x2c] sm:$0xff]   ;;  %v1661_v5 = vld [vmem:[#allocation5 + $0x34] sm:$0xff]   ;;  %vm469_vm1 = vcmask 1043456  }
  0x55   : > { %1806 = vsyncadd (%p2421_p2), [#allocation6], 4294965568  ;;  %1432 = vmatprep.subr.bf16.mxu0 %v1831_v0  ;;  %1478 = vmatprep.subr.bf16.mxu1 %v1831_v0  ;;  %v1658_v2 = vld [vmem:[#allocation5] sm:$0xff]   ;;  %v1660_v4 = vld [vmem:[#allocation5 + $0x8] sm:$0xff]   ;;  %vm342_vm2 = vsmask.f32 7424 }
  0x56   : > { %1442 = vmatprep.mubr.msk.bf16.mxu0 %vm1832_vm0, %v1831_v0  ;;  %1488 = vmatprep.mubr.msk.bf16.mxu1 %vm1832_vm0, %v1831_v0  ;;  %v1662_v6 = vld [vmem:[#allocation5 + $0x10] sm:$0xff]   ;;  %v1663_v7 = vld [vmem:[#allocation5 + $0x3c] sm:$0xff]   ;;  %v1665_v9 = vld [vmem:[#allocation5 + $0x44] ss:$0 sps:$4 sm:$0xff]   ;;  %vm441_vm3 = vcmask 588800   ;;  %vm749_vm4 = vcmask 1046528  }
  0x57   : > { %1433 = vmatpush3.bf16.msra.mxu0 %v1657_v1  ;;  %1479 = vmatpush3.bf16.msra.mxu1 %v1658_v2  ;;  %v1664_v8 = vld [vmem:[#allocation5 + $0x18] sm:$0xff]   ;;  %v1666_v14 = vld [vmem:[#allocation5 + $0x20] ss:$0 sps:$4 sm:$0xff]   ;;  %v471_v21 = vsel %vm469_vm1, %v1665_v9, 0  ;;  %v1669_v24 = vld [vmem:[#allocation5 + $0x48] sm:$0xff]   ;;  %vm1021_vm5 = vcmask 113664  }
  0x58   : > { %1434 = vmatprep.subr.bf16.mxu0 %v1831_v0  ;;  %1480 = vmatprep.subr.bf16.mxu1 %v1831_v0  ;;  %v259_v10 = vld [vmem:[%s2008_s7] sm:$0xf]  ;;  %v260_v11 = vld [vmem:[%s2008_s7 + $0x4] sm:$0xf]  ;;  %v2031_v13 = vld [vmem:[%s2008_s7 + $0x8] sm:$0xff]   ;;  %v628_v22 = vsel %vm469_vm1, %v1666_v14, 0 }
  0x59   : > { %v1306_v12 = vcombine.low %v259_v10, %v260_v11  ;;  %v351_v17 = vshll.u32 %v2031_v13, 16  ;;  %v2037_v20 = vld [vmem:[%s2008_s7 + $0x10] sm:$0xff]   ;;  %v355_v26 = vshrl.u32 %v2031_v13, 16  ;;  %v2049_v28 = vld [vmem:[%s2008_s7 + $0x18] sm:$0xff]   ;;  %v2058_v32 = vld [vmem:[%s2008_s7 + $0x20] sm:$0xff]   ;;  %v751_v43 = vrot.slane %v2031_v13, 1 }
  0x5a   : > { %v359_v27 = vshll.u32 %v2037_v20, 16  ;;  %v1672_v31 = vld [vmem:[#allocation5 + $0x50] sm:$0xff]   ;;  %v2061_v33 = vld [vmem:[%s2008_s7 + $0x28] sm:$0xff]   ;;  %v363_v39 = vshrl.u32 %v2037_v20, 16  ;;  %v367_v40 = vshll.u32 %v2049_v28, 16  ;;  %v2073_v41 = vld [vmem:[%s2008_s7 + $0x30] sm:$0xff]  }
  0x5b   : > { %1435 = vmatpush3.bf16.msra.mxu0 %v1659_v3  ;;  %1481 = vmatpush3.bf16.msra.mxu1 %v1660_v4  ;;  %v344_v15 = vshrl.u32 %v1306_v12, 16  ;;  %v346_v16 = vshll.u32 %v1306_v12, 16  ;;  %v353_v19 = vrot.slane %v351_v17, 1  ;;  %v1675_v34 = vld [vmem:[#allocation5 + $0x58] sm:$0xff]   ;;  %v2077_v44 = vld [vmem:[%s2008_s7 + $0x38] sm:$0xff]   ;;  %v753_v46 = vrot.slane %v2037_v20, 1 }
  0x5c   : > { %1436 = vmatprep.subr.bf16.mxu0 %v1831_v0  ;;  %1482 = vmatprep.subr.bf16.mxu1 %v1831_v0  ;;  %v361_v30 = vrot.slane %v359_v27, 1  ;;  %v2064_v35 = vld [vmem:[%s2008_s7 + $0x40] sm:$0xf]  ;;  %v286_v36 = vld [vmem:[%s2008_s7 + $0x44] sm:$0xf]  ;;  %v755_v47 = vrot.slane %v2049_v28, 1 }
  0x5d   : > { %v348_v18 = vrot.slane %v346_v16, 1  ;;  %v357_v29 = vor.u32 %v355_v26, %v353_v19  ;;  %v735_v37 = vld [vmem:[%s2008_s7] sm:$0xe]  ;;  %v2080_v45 = vcombine.low %v2064_v35, %v286_v36  ;;  %v757_v49 = vrot.slane %v2058_v32, 1  ;;  %v1680_v54 = vld [vmem:[#allocation5 + $0x68] ss:$0 sps:$4 sm:$0xff]  }
  0x5e   : > { %v1344_v42 = vcombine.low %v735_v37, %v260_v11  ;;  %v759_v50 = vrot.slane %v2061_v33, 1  ;;  %v761_v51 = vrot.slane %v2073_v41, 1  ;;  %v365_v52 = vor.u32 %v363_v39, %v361_v30  ;;  %v1678_v57 = vld [vmem:[#allocation5 + $0x60] sm:$0xff]   ;;  %s1305_s23 = sshll.u32 %s2004_s27, 5  ;;  %s1202_s12 = scalar_lea.sflag [#allocation4], %s2004_s27 }
  0x5f   : > { %1437 = vmatpush3.bf16.msra.mxu0 %v1661_v5  ;;  %1483 = vmatpush3.bf16.msra.mxu1 %v1662_v6  ;;  %v349_v23 = vor.u32 %v348_v18, %v344_v15  ;;  %v362_v38 = vsel %vm342_vm2, %v357_v29, %v361_v30  ;;  %v369_v53 = vrot.slane %v367_v40, 1  ;;  %v2093_v55 = vsel %vm749_vm4, %v751_v43, %v753_v46  ;;  %s257_s10 = scalar_lea.vmem [#allocation7], %s1305_s23  ;;  %s1834_s6 = smov [#allocation7]  }
  0x60   : > { %1438 = vmatprep.subr.bf16.mxu0 %v1831_v0  ;;  %1484 = vmatprep.subr.bf16.mxu1 %v1831_v0  ;;  %v750_v48 = vrot.slane %v1344_v42, 1  ;;  %v763_v56 = vrot.slane %v2077_v44, 1  ;;  %v2102_v59 = vsel %vm749_vm4, %v753_v46, %v755_v47  ;;  %v2105_v60 = vsel %vm749_vm4, %v755_v47, %v757_v49  ;;  %s1215_s28 = sshll.u32 %s257_s10, 4  ;;  %s1759_s14 = sshll.u32 %s1834_s6, 4  ;;  %s2352_s28 = int_to_ptr.vmem [resolvable:$true] %s1215_s28  ;;  %s1760_s14 = int_to_ptr.vmem [resolvable:$false] %s1759_s14 }
  0x61   : > { %v354_v25 = vsel %vm342_vm2, %v349_v23, %v353_v19  ;;  %v765_v61 = vrot.slane %v2080_v45, 1  ;;  %v2110_v62 = vsel %vm749_vm4, %v757_v49, %v759_v50  ;;  %v2113_v63 = vsel %vm749_vm4, %v759_v50, %v761_v51  ;;  %s1761_s15 = scalar_lea.vmem %s1760_s14, 1024  ;;  %p1762_p11 = scmp.lt.s32.totalorder %s2352_s28, %s1760_s14 }
  0x62   : > { %v2099_v58 = vsel %vm749_vm4, %v750_v48, %v751_v43  ;;  %v2116_v1 = vsel %vm749_vm4, %v761_v51, %v763_v56  ;;  %v370_v3 = vsel %vm342_vm2, %v365_v52, %v369_v53  ;;  %v371_v4 = vshrl.u32 %v2049_v28, 16 }
  0x63   : > { %1439 = vmatpush3.bf16.msra.mxu0 %v1663_v7  ;;  %1485 = vmatpush3.bf16.msra.mxu1 %v1664_v8  ;;  %v2121_v2 = vsel %vm749_vm4, %v763_v56, %v765_v61  ;;  %v375_v5 = vshll.u32 %v2058_v32, 16  ;;  %v822_v6 = vsel %vm469_vm1, %v1680_v54, 0  ;;  %v379_v10 = vshrl.u32 %v2058_v32, 16 }
  0x64   : > { %1440 = vmatprep.subr.bf16.mxu0 %v1831_v0  ;;  %1486 = vmatprep.subr.bf16.mxu1 %v1831_v0  ;;  %v373_v7 = vor.u32 %v371_v4, %v369_v53  ;;  %v383_v11 = vshll.u32 %v2061_v33, 16  ;;  %v387_v15 = vshrl.u32 %v2061_v33, 16  ;;  %v391_v16 = vshll.u32 %v2073_v41, 16 }
  0x65   : > { %v377_v8 = vrot.slane %v375_v5, 1  ;;  %v407_v26 = vshll.u32 %v2080_v45, 16  ;;  %v411_v30 = vshrl.u32 %v2080_v45, 16  ;;  %vm1196_vm6 = vcmask 261120  }
  0x66   : > { %v393_v18 = vrot.slane %v391_v16, 1 }
  0x67   : > { %1441 = vmatpush3.bf16.msra.mxu0 %v471_v21  ;;  %1487 = vmatpush3.bf16.msra.mxu1 %v628_v22  ;;  %v378_v9 = vsel %vm342_vm2, %v373_v7, %v377_v8  ;;  %v399_v21 = vshll.u32 %v2077_v44, 16 }
  0x68   : > { %1524 = vmatprep.subr.bf16.mxu0 %v1831_v0 }
  0x69   : > { %v401_v23 = vrot.slane %v399_v21, 1 }
  0x6a   : > { %1443 = vmatmul.mubr.msk.bf16.vlgmr.msra.gmra.mrb[0].mxu0 %vm441_vm3, %v354_v25  ;;  %1489 = vmatmul.mubr.msk.bf16.vlgmr.msra.gmra.mrb[0].mxu1 %vm441_vm3, %v1306_v12  ;;  %v381_v12 = vor.u32 %v379_v10, %v377_v8  ;;  %v403_v25 = vshrl.u32 %v2077_v44, 16 }
  0x6b   : > { %1525 = vmatpush3.bf16.msra.mxu0 %v1669_v24  ;;  %1446 = vmatprep.mubr.msk.bf16.mxu0 %vm1832_vm0, %v1831_v0 }
  0x6c   : > { %1492 = vmatprep.mubr.msk.bf16.mxu1 %vm1832_vm0, %v1831_v0  ;;  %1526 = vmatprep.subr.bf16.mxu0 %v1831_v0  ;;  %v405_v27 = vor.u32 %v403_v25, %v401_v23 }
  0x6f   : > { %1527 = vmatpush3.bf16.msra.mxu0 %v1672_v31  ;;  %v276_v31 = vld [vmem:[%s2008_s7 + $0x44] sm:$0x7]  ;;  %s1379_s7 = sshll.u32 %s1888_s22, 9  ;;  %s1755_s22 = scalar_lea.vmem %s2352_s28, 512 }
  0x70   : > { %1528 = vmatprep.subr.bf16.mxu0 %v1831_v0  ;;  %s2357_s17 = scalar_lea.hbm %s2405_s5, %s1379_s7  ;;  %p1756_p4 = scmp.ne.s32.totalorder %s2352_s28, %s1755_s22 }
  0x71   : > { %p1763_p10 = scmp.lt.s32.totalorder %s1761_s15, %s1755_s22 }
  0x72   : > { %1447 = vmatmul.mubr.msk.bf16.gmra.mrb[4].mxu0 %vm441_vm3, %v362_v38  ;;  %1493 = vmatmul.mubr.msk.bf16.gmra.mrb[4].mxu1 %vm441_vm3, %v2031_v13  ;;  %v385_v13 = vrot.slane %v383_v11, 1  ;;  %p1757_p6 = pnand %p1756_p4, %p1953_p12 }
  0x73   : > { %1450 = vmatprep.mubr.msk.bf16.mxu0 %vm1832_vm0, %v1831_v0  ;;  %1496 = vmatprep.mubr.msk.bf16.mxu1 %vm1832_vm0, %v1831_v0  ;;  %p1764_p3 = por %p1763_p10, %p1762_p11 }
  0x74   : > { %1529 = vmatpush3.bf16.msra.mxu0 %v1675_v34  ;;  %v386_v14 = vsel %vm342_vm2, %v381_v12, %v385_v13  ;;  %v389_v17 = vor.u32 %v387_v15, %v385_v13  ;;  %v1833_v34 = vmov 0   ;;  %p1758_p8 = pneg %p1757_p6 }
  0x75   : > { %1530 = vmatprep.subr.bf16.mxu0 %v1831_v0  ;;  %1032 = vmatprep.subr.bf16.mxu1 %v1833_v34 }
  0x76   : > { %v394_v19 = vsel %vm342_vm2, %v389_v17, %v393_v18  ;;  %p1765_p7 = pnand %p1764_p3, %p1758_p8 }
  0x78   : > { %1531 = vmatpush3.bf16.msra.mxu0 %v1678_v57 }
  0x79   : > { %1532 = vmatprep.subr.bf16.mxu0 %v1831_v0 }
  0x7a   : > { %1451 = vmatmul.mubr.msk.bf16.gmra.mrb[8].mxu0 %vm441_vm3, %v370_v3  ;;  %1497 = vmatmul.mubr.msk.bf16.gmra.mrb[8].mxu1 %vm441_vm3, %v2037_v20  ;;  %v395_v20 = vshrl.u32 %v2073_v41, 16 }
  0x7b   : > { %1454 = vmatprep.mubr.msk.bf16.mxu0 %vm1832_vm0, %v1831_v0  ;;  %1500 = vmatprep.mubr.msk.bf16.mxu1 %vm1832_vm0, %v1831_v0 }
  0x7c   : > { %1533 = vmatpush3.bf16.msra.mxu0 %v822_v6  ;;  %v397_v22 = vor.u32 %v395_v20, %v393_v18 }
  0x7e   : > { %v402_v24 = vsel %vm342_vm2, %v397_v22, %v401_v23 }
  0x82   : > { %1455 = vmatmul.mubr.msk.bf16.gmra.mrb[12].mxu0 %vm441_vm3, %v378_v9  ;;  %1501 = vmatmul.mubr.msk.bf16.gmra.mrb[12].mxu1 %vm441_vm3, %v2049_v28  ;;  %v409_v28 = vrot.slane %v407_v26, 1 }
  0x83   : > { %1458 = vmatprep.mubr.msk.bf16.mxu0 %vm1832_vm0, %v1831_v0  ;;  %1504 = vmatprep.mubr.msk.bf16.mxu1 %vm1832_vm0, %v1831_v0 }
  0x84   : > { %v410_v29 = vsel %vm342_vm2, %v405_v27, %v409_v28 }
  0x8a   : > { %1459 = vmatmul.mubr.msk.bf16.gmra.mrb[16].mxu0 %vm441_vm3, %v386_v14  ;;  %1505 = vmatmul.mubr.msk.bf16.gmra.mrb[16].mxu1 %vm441_vm3, %v2058_v32  ;;  %v413_v32 = vor.u32 %v411_v30, %v409_v28 }
  0x8b   : > { %1462 = vmatprep.mubr.msk.bf16.mxu0 %vm1832_vm0, %v1831_v0  ;;  %1508 = vmatprep.mubr.msk.bf16.mxu1 %vm1832_vm0, %v1831_v0 }
  0x92   : > { %1463 = vmatmul.mubr.msk.bf16.gmra.mrb[20].mxu0 %vm441_vm3, %v394_v19  ;;  %1509 = vmatmul.mubr.msk.bf16.gmra.mrb[20].mxu1 %vm441_vm3, %v2061_v33  ;;  %v1329_v33 = vcombine.low %v2064_v35, %v276_v31 }
  0x93   : > { %1466 = vmatprep.mubr.msk.bf16.mxu0 %vm1832_vm0, %v1831_v0  ;;  %1512 = vmatprep.mubr.msk.bf16.mxu1 %vm1832_vm0, %v1831_v0 }
  0x9a   : > { %1467 = vmatmul.mubr.msk.bf16.gmra.mrb[24].mxu0 %vm441_vm3, %v402_v24  ;;  %1513 = vmatmul.mubr.msk.bf16.gmra.mrb[24].mxu1 %vm441_vm3, %v2073_v41 }
  0x9b   : > { %1470 = vmatprep.mubr.msk.bf16.mxu0 %vm1832_vm0, %v1831_v0  ;;  %1516 = vmatprep.mubr.msk.bf16.mxu1 %vm1832_vm0, %v1831_v0 }
  0xa2   : > { %1471 = vmatmul.mubr.msk.bf16.gmra.mrb[28].mxu0 %vm441_vm3, %v410_v29  ;;  %1517 = vmatmul.mubr.msk.bf16.gmra.mrb[28].mxu1 %vm441_vm3, %v2077_v44 }
  0xa3   : > { %1474 = vmatprep.mubr.msk.bf16.mxu0 %vm1832_vm0, %v1831_v0  ;;  %1520 = vmatprep.mubr.msk.bf16.mxu1 %vm1832_vm0, %v1831_v0 }
  0xaa   : > { %1475 = vmatmul.mubr.msk.bf16.gmra.mrb[32].mxu0 %vm441_vm3, %v413_v32  ;;  %1521 = vmatmul.mubr.msk.bf16.gmra.mrb[32].mxu1 %vm441_vm3, %v1329_v33 }
  0xab   : > { %1534 = vmatprep.mubr.msk.bf16.mxu0 %vm1832_vm0, %v1831_v0 }
  0xb2   : > { %1535 = vmatmul.mubr.msk.bf16.vlgmr.msra.gmra.mrb[36].mxu0 %vm441_vm3, %v2099_v58 }
  0xb3   : > { %1538 = vmatprep.mubr.msk.bf16.mxu0 %vm1832_vm0, %v1831_v0 }
  0xba   : > { %1539 = vmatmul.mubr.msk.bf16.gmra.mrb[40].mxu0 %vm441_vm3, %v2093_v55 }
  0xbb   : > { %1542 = vmatprep.mubr.msk.bf16.mxu0 %vm1832_vm0, %v1831_v0 }
  0xc2   : > { %1543 = vmatmul.mubr.msk.bf16.gmra.mrb[44].mxu0 %vm441_vm3, %v2102_v59 }
  0xc3   : > { %1546 = vmatprep.mubr.msk.bf16.mxu0 %vm1832_vm0, %v1831_v0 }
  0xca   : > { %1547 = vmatmul.mubr.msk.bf16.gmra.mrb[48].mxu0 %vm441_vm3, %v2105_v60 }
  0xcb   : > { %1550 = vmatprep.mubr.msk.bf16.mxu0 %vm1832_vm0, %v1831_v0 }
  0xd2   : > { %1551 = vmatmul.mubr.msk.bf16.gmra.mrb[52].mxu0 %vm441_vm3, %v2110_v62 }
  0xd3   : > { %1554 = vmatprep.mubr.msk.bf16.mxu0 %vm1832_vm0, %v1831_v0 }
  0xda   : > { %1555 = vmatmul.mubr.msk.bf16.gmra.mrb[56].mxu0 %vm441_vm3, %v2113_v63 }
  0xdb   : > { %1558 = vmatprep.mubr.msk.bf16.mxu0 %vm1832_vm0, %v1831_v0 }
  0xe2   : > { %1559 = vmatmul.mubr.msk.bf16.gmra.mrb[60].mxu0 %vm441_vm3, %v2116_v1  ;;  %v1685_v1 = vld [vmem:[%s2403_s3 + $0x4] ss:$8 sps:$4 sm:$0xff]  }
  0xe3   : > { %1562 = vmatprep.mubr.msk.bf16.mxu0 %vm1832_vm0, %v1831_v0  ;;  %1364 = vmatprep.mubr.msk.bf16.mxu1 %vm1021_vm5, %v1685_v1 }
  0xea   : > { %1563 = vmatmul.mubr.msk.bf16.gmra.mrb[64].mxu0 %vm441_vm3, %v2121_v2 }
  0xeb   : > { %1566 = vmatprep.mubr.msk.bf16.mxu0 %vm1832_vm0, %v1831_v0 }
  0xf2   : > { %1567 = vmatmul.mubr.msk.bf16.gmra.mrb[68].mxu0 %vm441_vm3, %v765_v61 }
 0x13d   : > { %v507_v35 = vpop.f32.mrb[0].mxu0  ;;  %v664_v36 = vpop.f32.mrb[0].mxu1 }
 0x13e   : > { %v1444_v37 = vpop.f32.mrb[1].mxu0  ;;  %v2226_v38 = vadd.f32 %v664_v36, %v507_v35  ;;  %v1490_v39 = vpop.f32.mrb[1].mxu1 }
 0x13f   : > { %v510_v40 = vpop.f32.mrb[2].mxu0  ;;  %v667_v41 = vpop.f32.mrb[2].mxu1 }
 0x140   : > { %v1445_v42 = vpop.f32.mrb[3].mxu0  ;;  %v2228_v43 = vadd.f32 %v667_v41, %v510_v40  ;;  %v1491_v44 = vpop.f32.mrb[3].mxu1 }
 0x145   : > { %v515_v0 = vpop.f32.mrb[4].mxu0  ;;  %v672_v46 = vpop.f32.mrb[4].mxu1 }
 0x146   : > { %v1448_v45 = vpop.f32.mrb[5].mxu0  ;;  %v2230_v47 = vadd.f32 %v672_v46, %v515_v0  ;;  %v1494_v48 = vpop.f32.mrb[5].mxu1 }
 0x147   : > { %v518_v49 = vpop.f32.mrb[6].mxu0  ;;  %v675_v50 = vpop.f32.mrb[6].mxu1 }
 0x148   : > { %v1449_v51 = vpop.f32.mrb[7].mxu0  ;;  %v2232_v52 = vadd.f32 %v675_v50, %v518_v49  ;;  %v1495_v53 = vpop.f32.mrb[7].mxu1 }
 0x14d   : > { %v523_v54 = vpop.f32.mrb[8].mxu0  ;;  %v680_v55 = vpop.f32.mrb[8].mxu1 }
 0x14e   : > { %v1452_v56 = vpop.f32.mrb[9].mxu0  ;;  %v2234_v57 = vadd.f32 %v680_v55, %v523_v54  ;;  %v1498_v58 = vpop.f32.mrb[9].mxu1 }
 0x14f   : > { %v526_v59 = vpop.f32.mrb[10].mxu0  ;;  %v683_v60 = vpop.f32.mrb[10].mxu1 }
 0x150   : > { %v1453_v61 = vpop.f32.mrb[11].mxu0  ;;  %v2236_v62 = vadd.f32 %v683_v60, %v526_v59  ;;  %v1499_v63 = vpop.f32.mrb[11].mxu1 }
 0x155   : > { %v531_v2 = vpop.f32.mrb[12].mxu0  ;;  %v688_v3 = vpop.f32.mrb[12].mxu1 }
 0x156   : > { %v1456_v4 = vpop.f32.mrb[13].mxu0  ;;  %v2242_v5 = vadd.f32 %v688_v3, %v531_v2  ;;  %v1502_v6 = vpop.f32.mrb[13].mxu1 }
 0x157   : > { %v534_v7 = vpop.f32.mrb[14].mxu0  ;;  %v691_v8 = vpop.f32.mrb[14].mxu1 }
 0x158   : > { %v1457_v9 = vpop.f32.mrb[15].mxu0  ;;  %v2244_v10 = vadd.f32 %v691_v8, %v534_v7  ;;  %v1503_v11 = vpop.f32.mrb[15].mxu1  ;;  %v2269_v7 = vld [vmem:[%s2402_s2] ss:$0 sm:$0xff] }
 0x15d   : > { %v539_v12 = vpop.f32.mrb[16].mxu0  ;;  %v696_v13 = vpop.f32.mrb[16].mxu1 }
 0x15e   : > { %v1460_v14 = vpop.f32.mrb[17].mxu0  ;;  %v2246_v15 = vadd.f32 %v696_v13, %v539_v12  ;;  %v1506_v16 = vpop.f32.mrb[17].mxu1 }
 0x15f   : > { %v542_v17 = vpop.f32.mrb[18].mxu0  ;;  %v699_v18 = vpop.f32.mrb[18].mxu1 }
 0x160   : > { %v1461_v19 = vpop.f32.mrb[19].mxu0  ;;  %v2248_v20 = vadd.f32 %v699_v18, %v542_v17  ;;  %v1507_v21 = vpop.f32.mrb[19].mxu1 }
 0x165   : > { %v547_v22 = vpop.f32.mrb[20].mxu0  ;;  %v704_v23 = vpop.f32.mrb[20].mxu1 }
 0x166   : > { %v1464_v24 = vpop.f32.mrb[21].mxu0  ;;  %v2250_v25 = vadd.f32 %v704_v23, %v547_v22  ;;  %v1510_v26 = vpop.f32.mrb[21].mxu1 }
 0x167   : > { %v550_v27 = vpop.f32.mrb[22].mxu0  ;;  %v707_v28 = vpop.f32.mrb[22].mxu1 }
 0x168   : > { %v1465_v29 = vpop.f32.mrb[23].mxu0  ;;  %v2252_v30 = vadd.f32 %v707_v28, %v550_v27  ;;  %v1511_v31 = vpop.f32.mrb[23].mxu1 }
 0x16d   : > { %v555_v32 = vpop.f32.mrb[24].mxu0  ;;  %v712_v33 = vpop.f32.mrb[24].mxu1 }
 0x16e   : > { %v1468_v35 = vpop.f32.mrb[25].mxu0  ;;  %v2254_v36 = vadd.f32 %v712_v33, %v555_v32  ;;  %v1514_v37 = vpop.f32.mrb[25].mxu1 }
 0x16f   : > { %v558_v39 = vpop.f32.mrb[26].mxu0  ;;  %v715_v40 = vpop.f32.mrb[26].mxu1 }
 0x170   : > { %v1469_v41 = vpop.f32.mrb[27].mxu0  ;;  %v2256_v42 = vadd.f32 %v715_v40, %v558_v39  ;;  %v1515_v44 = vpop.f32.mrb[27].mxu1 }
 0x175   : > { %v563_v0 = vpop.f32.mrb[28].mxu0  ;;  %v720_v46 = vpop.f32.mrb[28].mxu1 }
 0x176   : > { %v1472_v45 = vpop.f32.mrb[29].mxu0  ;;  %v2258_v48 = vadd.f32 %v720_v46, %v563_v0  ;;  %v1518_v49 = vpop.f32.mrb[29].mxu1 }
 0x177   : > { %v566_v50 = vpop.f32.mrb[30].mxu0  ;;  %v723_v51 = vpop.f32.mrb[30].mxu1 }
 0x178   : > { %v1473_v53 = vpop.f32.mrb[31].mxu0  ;;  %v2260_v54 = vadd.f32 %v723_v51, %v566_v50  ;;  %v1519_v55 = vpop.f32.mrb[31].mxu1 }
 0x17d   : > { %v571_v56 = vpop.f32.mrb[32].mxu0  ;;  %v728_v58 = vpop.f32.mrb[32].mxu1 }
 0x17e   : > { %v1476_v59 = vpop.f32.mrb[33].mxu0  ;;  %v2262_v60 = vadd.f32 %v728_v58, %v571_v56  ;;  %v1522_v61 = vpop.f32.mrb[33].mxu1 }
 0x17f   : > { %v574_v63 = vpop.f32.mrb[34].mxu0  ;;  %v731_v1 = vpop.f32.mrb[34].mxu1 }
 0x180   : > { %v1477_v2 = vpop.f32.mrb[35].mxu0  ;;  %v2264_v3 = vadd.f32 %v731_v1, %v574_v63  ;;  %v1523_v4 = vpop.f32.mrb[35].mxu1 }
 0x185   : > { %v858_v6 = vpop.f32.mrb[36].mxu0 }
 0x186   : > { %v929_v8 = vadd.f32 %v858_v6, %v2226_v38  ;;  %v1536_v9 = vpop.f32.mrb[37].mxu0 }
 0x187   : > { %v861_v11 = vpop.f32.mrb[38].mxu0 }
 0x188   : > { %v954_v12 = vadd.f32 %v2269_v7, %v929_v8  ;;  %v930_v13 = vadd.f32 %v861_v11, %v2228_v43  ;;  %v1537_v14 = vpop.f32.mrb[39].mxu0 }
 0x18a   : > { %v955_v16 = vadd.f32 %v2269_v7, %v930_v13  ;;  %v972_v17 = vmax.f32 %v954_v12, 0.0 }
 0x18c   : > { %v973_v18 = vmax.f32 %v955_v16, 0.0 }
 0x18d   : > { %v866_v19 = vpop.f32.mrb[40].mxu0 }
 0x18e   : > { %v990_v21 = vpack.c.bf16 %v973_v18, %v972_v17  ;;  %v931_v22 = vadd.f32 %v866_v19, %v2230_v47  ;;  %v1540_v23 = vpop.f32.mrb[41].mxu0 }
 0x18f   : > { %v869_v24 = vpop.f32.mrb[42].mxu0 }
 0x190   : > { %v956_v26 = vadd.f32 %v2269_v7, %v931_v22  ;;  %v932_v38 = vadd.f32 %v869_v24, %v2232_v52  ;;  %v1541_v27 = vpop.f32.mrb[43].mxu0  ;;  %1033 = vmatpush1.bf16.msra.mxu1 %v990_v21 }
 0x191   : > { %1034 = vmatprep.subr.bf16.mxu1 %v1833_v34 }
 0x192   : > { %v957_v43 = vadd.f32 %v2269_v7, %v932_v38  ;;  %v974_v28 = vmax.f32 %v956_v26, 0.0 }
 0x194   : > { %v975_v29 = vmax.f32 %v957_v43, 0.0 }
 0x195   : > { %v874_v31 = vpop.f32.mrb[44].mxu0 }
 0x196   : > { %v991_v32 = vpack.c.bf16 %v975_v29, %v974_v28  ;;  %v933_v33 = vadd.f32 %v874_v31, %v2234_v57  ;;  %v1544_v35 = vpop.f32.mrb[45].mxu0 }
 0x197   : > { %v877_v47 = vpop.f32.mrb[46].mxu0 }
 0x198   : > { %v958_v37 = vadd.f32 %v2269_v7, %v933_v33  ;;  %v934_v39 = vadd.f32 %v877_v47, %v2236_v62  ;;  %v1545_v40 = vpop.f32.mrb[47].mxu0  ;;  %1035 = vmatpush1.bf16.msra.mxu1 %v991_v32 }
 0x199   : > { %1036 = vmatprep.subr.bf16.mxu1 %v1833_v34 }
 0x19a   : > { %v959_v52 = vadd.f32 %v2269_v7, %v934_v39  ;;  %v976_v41 = vmax.f32 %v958_v37, 0.0 }
 0x19c   : > { %v977_v44 = vmax.f32 %v959_v52, 0.0 }
 0x19d   : > { %v882_v0 = vpop.f32.mrb[48].mxu0 }
 0x19e   : > { %v992_v46 = vpack.c.bf16 %v977_v44, %v976_v41  ;;  %v935_v45 = vadd.f32 %v882_v0, %v2242_v5  ;;  %v1548_v49 = vpop.f32.mrb[49].mxu0 }
 0x19f   : > { %v885_v57 = vpop.f32.mrb[50].mxu0 }
 0x1a0   : > { %v960_v50 = vadd.f32 %v2269_v7, %v935_v45  ;;  %v936_v51 = vadd.f32 %v885_v57, %v2244_v10  ;;  %v1549_v53 = vpop.f32.mrb[51].mxu0  ;;  %1037 = vmatpush1.bf16.msra.mxu1 %v992_v46 }
 0x1a1   : > { %1038 = vmatprep.subr.bf16.mxu1 %v1833_v34  ;;  %v1689_v53 = vld [vmem:[%s2404_s4] sm:$0xff]  }
 0x1a2   : > { %v961_v62 = vadd.f32 %v2269_v7, %v936_v51  ;;  %v978_v55 = vmax.f32 %v960_v50, 0.0 }
 0x1a4   : > { %v979_v56 = vmax.f32 %v961_v62, 0.0  ;;  %v1683_v62 = vld [vmem:[%s2403_s3] ss:$8 sps:$4 sm:$0xff]  }
 0x1a5   : > { %v890_v58 = vpop.f32.mrb[52].mxu0 }
 0x1a6   : > { %v993_v59 = vpack.c.bf16 %v979_v56, %v978_v55  ;;  %v937_v61 = vadd.f32 %v890_v58, %v2246_v15  ;;  %v1552_v63 = vpop.f32.mrb[53].mxu0  ;;  %v1688_v55 = vld [vmem:[%s2403_s3 + $0x10] ss:$8 sps:$4 sm:$0xff]   ;;  %v1693_v58 = vld [vmem:[%s2404_s4 + $0x20] sm:$0xff]  }
 0x1a7   : > { %v893_v5 = vpop.f32.mrb[54].mxu0  ;;  %v1692_v56 = vld [vmem:[%s2404_s4 + $0x18] sm:$0xff]  }
 0x1a8   : > { %v962_v1 = vadd.f32 %v2269_v7, %v937_v61  ;;  %v938_v2 = vadd.f32 %v893_v5, %v2248_v20  ;;  %v1553_v4 = vpop.f32.mrb[55].mxu0  ;;  %1039 = vmatpush1.bf16.msra.mxu1 %v993_v59  ;;  %v1694_v59 = vld [vmem:[%s2404_s4 + $0x28] sm:$0xff]   ;;  %v1695_v61 = vld [vmem:[%s2404_s4 + $0x30] sm:$0xff]   ;;  %v1696_v63 = vld [vmem:[%s2404_s4 + $0x38] sm:$0xff]  }
 0x1a9   : > { %1040 = vmatprep.subr.bf16.mxu1 %v1833_v34 }
 0x1aa   : > { %v963_v10 = vadd.f32 %v2269_v7, %v938_v2  ;;  %v980_v6 = vmax.f32 %v962_v1, 0.0 }
 0x1ac   : > { %v981_v8 = vmax.f32 %v963_v10, 0.0 }
 0x1ad   : > { %v898_v9 = vpop.f32.mrb[56].mxu0 }
 0x1ae   : > { %v994_v11 = vpack.c.bf16 %v981_v8, %v980_v6  ;;  %v939_v12 = vadd.f32 %v898_v9, %v2250_v25  ;;  %v1556_v13 = vpop.f32.mrb[57].mxu0 }
 0x1af   : > { %v901_v15 = vpop.f32.mrb[58].mxu0 }
 0x1b0   : > { %v964_v14 = vadd.f32 %v2269_v7, %v939_v12  ;;  %v940_v16 = vadd.f32 %v901_v15, %v2252_v30  ;;  %v1557_v17 = vpop.f32.mrb[59].mxu0  ;;  %1041 = vmatpush1.bf16.msra.mxu1 %v994_v11 }
 0x1b1   : > { %1042 = vmatprep.subr.bf16.mxu1 %v1833_v34 }
 0x1b2   : > { %v965_v20 = vadd.f32 %v2269_v7, %v940_v16  ;;  %v982_v18 = vmax.f32 %v964_v14, 0.0 }
 0x1b4   : > { %v983_v19 = vmax.f32 %v965_v20, 0.0 }
 0x1b5   : > { %v906_v21 = vpop.f32.mrb[60].mxu0 }
 0x1b6   : > { %v995_v22 = vpack.c.bf16 %v983_v19, %v982_v18  ;;  %v941_v23 = vadd.f32 %v906_v21, %v2254_v36  ;;  %v1560_v24 = vpop.f32.mrb[61].mxu0 }
 0x1b7   : > { %v909_v25 = vpop.f32.mrb[62].mxu0 }
 0x1b8   : > { %v966_v26 = vadd.f32 %v2269_v7, %v941_v23  ;;  %v942_v38 = vadd.f32 %v909_v25, %v2256_v42  ;;  %v1561_v27 = vpop.f32.mrb[63].mxu0  ;;  %1043 = vmatpush1.bf16.msra.mxu1 %v995_v22 }
 0x1b9   : > { %1044 = vmatprep.subr.bf16.mxu1 %v1833_v34 }
 0x1ba   : > { %v967_v30 = vadd.f32 %v2269_v7, %v942_v38  ;;  %v984_v43 = vmax.f32 %v966_v26, 0.0 }
 0x1bc   : > { %v985_v28 = vmax.f32 %v967_v30, 0.0 }
 0x1bd   : > { %v914_v29 = vpop.f32.mrb[64].mxu0 }
 0x1be   : > { %v996_v31 = vpack.c.bf16 %v985_v28, %v984_v43  ;;  %v943_v32 = vadd.f32 %v914_v29, %v2258_v48  ;;  %v1564_v33 = vpop.f32.mrb[65].mxu0 }
 0x1bf   : > { %v917_v36 = vpop.f32.mrb[66].mxu0 }
 0x1c0   : > { %v968_v35 = vadd.f32 %v2269_v7, %v943_v32  ;;  %v944_v47 = vadd.f32 %v917_v36, %v2260_v54  ;;  %v1565_v37 = vpop.f32.mrb[67].mxu0  ;;  %1045 = vmatpush1.bf16.msra.mxu1 %v996_v31 }
 0x1c1   : > { %1046 = vmatprep.subr.bf16.mxu1 %v1833_v34 }
 0x1c2   : > { %v969_v42 = vadd.f32 %v2269_v7, %v944_v47  ;;  %v986_v39 = vmax.f32 %v968_v35, 0.0 }
 0x1c4   : > { %v987_v40 = vmax.f32 %v969_v42, 0.0 }
 0x1c5   : > { %v922_v52 = vpop.f32.mrb[68].mxu0 }
 0x1c6   : > { %v997_v41 = vpack.c.bf16 %v987_v40, %v986_v39  ;;  %v945_v44 = vadd.f32 %v922_v52, %v2262_v60  ;;  %v1568_v0 = vpop.f32.mrb[69].mxu0 }
 0x1c7   : > { %v925_v48 = vpop.f32.mrb[70].mxu0 }
 0x1c8   : > { %v970_v46 = vadd.f32 %v2269_v7, %v945_v44  ;;  %v946_v45 = vadd.f32 %v925_v48, %v2264_v3  ;;  %v1569_v49 = vpop.f32.mrb[71].mxu0  ;;  %1047 = vmatpush1.bf16.msra.mxu1 %v997_v41  ;;  %v1690_v3 = vld [vmem:[%s2404_s4 + $0x8] sm:$0xff]  }
 0x1c9   : > { %1048 = vmatprep.subr.bf16.mxu1 %v1833_v34  ;;  %v1686_v34 = vld [vmem:[%s2403_s3 + $0x14] ss:$8 sps:$4 sm:$0xff]  }
 0x1ca   : > { %v971_v54 = vadd.f32 %v2269_v7, %v946_v45  ;;  %v988_v57 = vmax.f32 %v970_v46, 0.0  ;;  %v1691_v7 = vld [vmem:[%s2404_s4 + $0x10] sm:$0xff]  }
 0x1cc   : > { %v989_v50 = vmax.f32 %v971_v54, 0.0 }
 0x1ce   : > { %v998_v51 = vpack.c.bf16 %v989_v50, %v988_v57 }
 0x1d0   : > { %v1030_v60 = vsel %vm749_vm4, %v998_v51, 0 }
 0x1d1   : > { %1049 = vmatpush1.bf16.msra.mxu1 %v1030_v60 }
 0x1d2   : > { %1570 = vmatprep.subr.bf16.mxu1 %v1689_v53 }
 0x1d4   : > { %1065 = vmatmul.mubr.bf16.vlgmr.msra.gmra.mrb[36].mxu1 %v1683_v62 }
 0x1d5   : > { %1365 = vmatprep.mubr.msk.bf16.mxu1 %vm1021_vm5, %v1686_v34  ;;  %1571 = vmatpush3.bf16.msra.mxu1 %v1689_v53 }
 0x1d6   : > { %1572 = vmatprep.subr.bf16.mxu1 %v1690_v3 }
 0x1d9   : > { %1573 = vmatpush3.bf16.msra.mxu1 %v1690_v3 }
 0x1da   : > { %1574 = vmatprep.subr.bf16.mxu1 %v1691_v7 }
 0x1dc   : > { %1073 = vmatmul.mubr.bf16.gmra.mrb[40].mxu1 %v1688_v55 }
 0x1dd   : > { %1575 = vmatpush3.bf16.msra.mxu1 %v1691_v7 }
 0x1de   : > { %1576 = vmatprep.subr.bf16.mxu1 %v1692_v56 }
 0x1e1   : > { %1577 = vmatpush3.bf16.msra.mxu1 %v1692_v56 }
 0x1e2   : > { %1578 = vmatprep.subr.bf16.mxu1 %v1693_v58 }
 0x1e5   : > { %1579 = vmatpush3.bf16.msra.mxu1 %v1693_v58 }
 0x1e6   : > { %1580 = vmatprep.subr.bf16.mxu1 %v1694_v59 }
 0x1e9   : > { %1581 = vmatpush3.bf16.msra.mxu1 %v1694_v59 }
 0x1ea   : > { %1582 = vmatprep.subr.bf16.mxu1 %v1695_v61 }
 0x1ed   : > { %1583 = vmatpush3.bf16.msra.mxu1 %v1695_v61 }
 0x1ee   : > { %1584 = vmatprep.subr.bf16.mxu1 %v1696_v63 }
 0x1f1   : > { %1585 = vmatpush3.bf16.msra.mxu1 %v1696_v63 }
 0x2a7   : > { %v1066_v5 = vpop.f32.mrb[36].mxu1 }
 0x2a8   : > { %v1068_v1 = vpop.f32.mrb[37].mxu1 }
 0x2a9   : > { %v1069_v2 = vpop.f32.mrb[38].mxu1 }
 0x2aa   : > { %v1081_v4 = vpack.c.bf16 %v1069_v2, %v1066_v5  ;;  %v1071_v10 = vpop.f32.mrb[39].mxu1 }
 0x2ac   : > { %1586 = vmatprep.mubr.bf16.mxu1 %v1081_v4 }
 0x2af   : > { %v1074_v6 = vpop.f32.mrb[40].mxu1 }
 0x2b0   : > { %v1076_v8 = vpop.f32.mrb[41].mxu1 }
 0x2b1   : > { %v1077_v9 = vpop.f32.mrb[42].mxu1 }
 0x2b2   : > { %v1082_v11 = vpack.c.bf16 %v1077_v9, %v1074_v6  ;;  %v1079_v12 = vpop.f32.mrb[43].mxu1 }
 0x2b4   : > { %1587 = vmatmul.mubr.bf16.vlgmr.msra.gmra.mrb[44].mxu1 %v1082_v11 }
 0x387   : > { %v1588_v13 = vpop.f32.mrb[44].mxu1 }
 0x388   : > { %1199 = vst.msk [vmem:[%s257_s10 + $0x10] sm:$0xff] %vm1196_vm6, %v1588_v13  ;;  %v1181_v15 = vpop.f32.mrb[45].mxu1 }
 0x389   : > { %1197 = vst.msk [vmem:[%s257_s10] sm:$0xff] %vm1196_vm6, %v1181_v15  ;;  %v1589_v14 = vpop.f32.mrb[46].mxu1 }
 0x38a   : > { %1200 = vst.msk [vmem:[%s257_s10 + $0x18] sm:$0xff] %vm1196_vm6, %v1589_v14  ;;  %v1184_v16 = vpop.f32.mrb[47].mxu1 }
 0x38b   : > { %1198 = vst.msk [vmem:[%s257_s10 + $0x8] sm:$0xff] %vm1196_vm6, %v1184_v16 }
 0x38c   : > { %1768 = shalt.err (!%p1765_p7)
}
 0x38d   : > { %s1769_s29 = scalar_lea.hbm %s2357_s17, 512  ;;  %s1773_s16 = scalar_lea.hbm %s2405_s5, 4096 }
 0x38e   : > { %p1770_p9 = scmp.ne.s32.totalorder %s2357_s17, %s1769_s29  ;;  %p1774_p5 = scmp.lt.u32.totalorder %s2357_s17, %s2405_s5 }
 0x38f   : > { %p1775_p13 = scmp.lt.u32.totalorder %s1773_s16, %s1769_s29  ;;  %p1777_p4 = scmp.lt.u32.totalorder %s1769_s29, %s2357_s17 }
 0x390   : > { %p1771_p1 = pnand %p1770_p9, %p1953_p12 }
 0x391   : > { %p1776_p2 = por %p1775_p13, %p1774_p5 }
 0x392   : > { %p1772_p0 = pneg %p1771_p1 }
 0x393   : > { %p1778_p6 = por %p1777_p4, %p1776_p2 }
 0x395   : > { %p1779_p8 = pnand %p1778_p6, %p1772_p0 }
 0x397   : > { %1782 = shalt.err (!%p1779_p8)
}
 0x398   : > { %s1835_s7 = smov 128   ;;  %s1836_s24 = smov 8  }
 0x399   : > { %1599 = dma.vmem_to_hbm [thread:$0]  (%p1953_p12), %s2352_s28, 512, %s2357_s17, %s1202_s12, %s1835_s7, %s1835_s7, %s1836_s24  }
 0x39a PF: > { %p1616_p11 = scmp.ge.s32.totalorder %s1825_s21, 2  ;;  %s1230_s26 = sand.u32 1, %s1813_s18  }
 0x39b   : > { %p2422_p10 = scmp.ne.s32.totalorder %s2411_s25, 0  ;;  %s1231_s22 = scalar_lea.sflag [#allocation4], %s1230_s26 }
 0x39d   : > { %p1610_p3 = pnand %p1616_p11, %p2422_p10 }
 0x39f   : > { %1808 = dma.done.wait (!%p1610_p3), %s1231_s22, 512  }
 0x3a0   : > { %1810 = vsyncadd (!%p1610_p3), %s1231_s22, 4294966784  ;;  %p19_p7 = scmp.ge.s32.totalorder %s1920_s30, 10   ;;  %s2423_s18 = smov %s1817_s19 }
 0x3a1   : > { %s2424_s19 = smov %s1821_s20  ;;  %s2425_s20 = smov %s1949_s8 }
 0x3a2   : > { %s2426_s21 = smov %s1920_s30  ;;  %21 = sbr.rel (!%p19_p7) target bundleno = 6 (0x6), region = 91 }
 0x3a9   :  { %1236 = vsyncpa [#allocation3], 1 }
 0x3aa   :  { %1238 = vsyncpa [#allocation3 + $0x1], 1 }
 0x3ab   :  { %1239 = vsyncpa [#allocation6], 1 }
 0x3ac   :  { %1240 = vsyncpa [#allocation4], 1 }
 0x3ad   :  { %1242 = vsyncpa [#allocation4 + $0x1], 1 }

</bundles_post_ra>
